<compile_context>
chip_gen: v7x
topology: tpu7x:2x2x1
jax: 0.10.0
libtpu: 0.0.40
codegen_flags: <defaults>
</compile_context>

<pallas_src>
import functools
import math

import jax
import jax.numpy as jnp
from jax import lax
from jax.experimental import pallas as pl
from jax.experimental.pallas import tpu as pltpu


# --------------------------------------------------------------------------
# Pallas kernel: focal loss sum over one (C, block_hw) tile of one image.
# --------------------------------------------------------------------------
def _focal_seg_kernel(*refs, gamma, num_classes, hw, block_hw, has_alpha,
                      multi_tile, mask_tail):
    refs = list(refs)
    x_ref = refs.pop(0)                          # (1, C, BHW)  logits tile
    t_ref = refs.pop(0)                          # (1, 1, BHW)  int32 targets
    a_ref = refs.pop(0) if has_alpha else None   # (C,) alpha table in SMEM
    out_ref = refs.pop(0)                        # (1, 1, 128)  per-image sum
    acc_ref = refs.pop(0) if multi_tile else None

    if multi_tile:
        j = pl.program_id(1)

        @pl.when(j == 0)
        def _():
            acc_ref[...] = jnp.zeros_like(acc_ref)

    x = x_ref[0].astype(jnp.float32)             # (C, BHW)
    t = t_ref[0]                                 # (1, BHW)

    # log-softmax over the class (sublane) axis
    m = jnp.max(x, axis=0, keepdims=True)        # (1, BHW)
    shifted = x - m                              # (C, BHW)
    sum_exp = jnp.sum(jnp.exp(shifted), axis=0, keepdims=True)   # (1, BHW)

    # gather(1, target) via one-hot select (vector friendly, no XLU gather)
    cls = lax.broadcasted_iota(jnp.int32, (num_classes, block_hw), 0)
    onehot = cls == t                            # (C, BHW)
    shifted_t = jnp.sum(jnp.where(onehot, shifted, 0.0), axis=0, keepdims=True)
    logpt = shifted_t - jnp.log(sum_exp)         # (1, BHW)

    # alpha.gather(0, target): alpha lives in SMEM; skipped when alpha is None
    if has_alpha:
        at = jnp.zeros((1, block_hw), jnp.float32)
        for cc in range(num_classes):
            at = jnp.where(t == cc, a_ref[cc], at)
        logpt_w = logpt * at
    else:
        logpt_w = logpt

    # focal modulation, specialized on the static gamma
    if gamma == 0.0:
        loss = -logpt_w                          # (1 - pt)^0 == 1, skip pt
    else:
        pt = jnp.exp(logpt)
        omp = 1.0 - pt
        if gamma == 1.0:
            mod = omp
        elif gamma == 2.0:
            mod = omp * omp
        elif gamma == 3.0:
            mod = omp * omp * omp
        else:
            mod = jnp.power(omp, jnp.float32(gamma))
        loss = -mod * logpt_w

    # mask the ragged spatial tail only when it statically exists; jnp.where
    # selects, so NaN/Inf in masked columns cannot propagate.
    if mask_tail:
        jj = pl.program_id(1) if multi_tile else 0
        col = jj * block_hw + lax.broadcasted_iota(jnp.int32, (1, block_hw), 1)
        loss = jnp.where(col < hw, loss, 0.0)

    if multi_tile:
        acc_ref[...] += loss

        @pl.when(j == pl.num_programs(1) - 1)
        def _():
            out_ref[...] = (jnp.zeros(out_ref.shape, jnp.float32)
                            + jnp.sum(acc_ref[...]))
    else:
        # single spatial tile: no scratch, no init/finalize guards.
        out_ref[...] = jnp.zeros(out_ref.shape, jnp.float32) + jnp.sum(loss)


# --------------------------------------------------------------------------
# Wrapper: FocalLoss1.forward semantics.
# --------------------------------------------------------------------------
def focal_loss(x, target, gamma=0.0, alpha=None, size_average=True,
               block_hw=32768):
    x = jnp.asarray(x)
    target = jnp.asarray(target)

    if x.ndim > 2:
        n, c = int(x.shape[0]), int(x.shape[1])
        hw = int(math.prod(x.shape[2:]))
        x3 = x.reshape(n, c, hw)                         # free (contiguous)
        t3 = target.reshape(n, 1, hw).astype(jnp.int32)
    else:
        # (M, C) input: single transpose so M becomes the 128-lane axis.
        mrows, c = int(x.shape[0]), int(x.shape[1])
        n, hw = 1, mrows
        x3 = x.T.reshape(1, c, hw)
        t3 = target.reshape(1, 1, hw).astype(jnp.int32)

    # alpha table (same semantics as the PyTorch module __init__)
    if alpha is None:
        a = None
    elif isinstance(alpha, (float, int)):
        a = jnp.array([float(alpha), 1.0 - float(alpha)], jnp.float32)
    else:
        a = jnp.asarray(alpha, jnp.float32).reshape(-1)
    if a is not None and int(a.shape[0]) != c:
        raise ValueError(f"alpha has {int(a.shape[0])} entries for {c} classes")

    # spatial tile: lane-dense and large, sized to stay well inside the
    # double-buffered VMEM budget of every generation (incl. v7x's 64 MiB).
    bhw = max(128, (int(block_hw) // 128) * 128)
    hw_rounded = pl.cdiv(hw, 128) * 128
    vmem_cap = max(128, ((4 * 1024 * 1024) // (4 * c)) // 128 * 128)
    bhw = min(bhw, hw_rounded, vmem_cap)
    num_j = int(pl.cdiv(hw, bhw))
    grid = (n, num_j)

    multi_tile = num_j > 1
    mask_tail = (hw % bhw) != 0

    kernel = functools.partial(
        _focal_seg_kernel, gamma=float(gamma), num_classes=c, hw=hw,
        block_hw=bhw, has_alpha=a is not None, multi_tile=multi_tile,
        mask_tail=mask_tail)

    in_specs = [
        pl.BlockSpec((1, c, bhw), lambda ni, ji: (ni, 0, ji)),   # logits tile
        pl.BlockSpec((1, 1, bhw), lambda ni, ji: (ni, 0, ji)),   # target tile
    ]
    args = [x3, t3]
    if a is not None:
        in_specs.append(pl.BlockSpec(memory_space=pltpu.MemorySpace.SMEM))
        args.append(a)

    scratch_shapes = ([pltpu.VMEM((1, bhw), jnp.float32)] if multi_tile else [])

    partials = pl.pallas_call(
        kernel,
        out_shape=jax.ShapeDtypeStruct((n, 1, 128), jnp.float32),
        grid_spec=pltpu.PrefetchScalarGridSpec(
            num_scalar_prefetch=0,
            grid=grid,
            in_specs=in_specs,
            out_specs=pl.BlockSpec((1, 1, 128), lambda ni, ji: (ni, 0, 0)),
            scratch_shapes=scratch_shapes,
        ),
        compiler_params=pltpu.CompilerParams(
            dimension_semantics=("parallel", "arbitrary"),
            vmem_limit_bytes=32 * 1024 * 1024),
    )(*args)

    total = jnp.sum(partials[:, 0, 0])
    if size_average:
        return total / jnp.float32(n * hw)
    return total


# --------------------------------------------------------------------------
# MultiTaskLossWrapper_seg.forward (plain-JAX glue around the Pallas loss).
# --------------------------------------------------------------------------
def multi_task_loss_wrapper_seg_forward(outputs, targets, weights, log_vars,
                                        loss_fn):
    std_1 = jnp.exp(log_vars[0]) ** 0.5
    std_2 = jnp.exp(log_vars[1]) ** 0.5
    seg_loss, loss1, loss2, loss3 = loss_fn[0](outputs[0], targets[0],
                                               weights[0])
    seg_term = 0.5 * jnp.exp(-log_vars[0]) * seg_loss + log_vars[0]
    seg_loss_1 = jnp.sum(jnp.atleast_1d(seg_term), axis=-1)
    loss = jnp.mean(seg_loss_1)
    return (loss, seg_loss, loss1, loss2, loss3, std_1, std_2,
            log_vars[0], log_vars[1])


# --------------------------------------------------------------------------
# Pure-JAX reference for the focal loss (mirrors the PyTorch code).
# --------------------------------------------------------------------------
def _focal_loss_ref(x, target, gamma=0.0, alpha=None, size_average=True):
    if x.ndim > 2:
        n, c = x.shape[0], x.shape[1]
        x2 = x.reshape(n, c, -1).transpose(0, 2, 1).reshape(-1, c)
    else:
        x2 = x
        c = x.shape[-1]
    t = target.reshape(-1).astype(jnp.int32)
    logp = jax.nn.log_softmax(x2, axis=1)
    logpt = jnp.take_along_axis(logp, t[:, None], axis=1)[:, 0]
    pt = jnp.exp(logpt)
    if alpha is not None:
        if isinstance(alpha, (float, int)):
            a = jnp.array([float(alpha), 1.0 - float(alpha)], jnp.float32)
        else:
            a = jnp.asarray(alpha, jnp.float32)
        logpt = logpt * a[t]
    loss = -jnp.power(1.0 - pt, gamma) * logpt
    return loss.mean() if size_average else loss.sum()


if __name__ == "__main__":
    key = jax.random.PRNGKey(0)
    k1, k2 = jax.random.split(key)

    N, C, H, W = 2, 4, 16, 16
    x = jax.random.normal(k1, (N, C, H, W), jnp.float32)
    target = jax.random.randint(k2, (N, H, W), 0, C)

    # --- focal-loss kernel vs pure-JAX reference (module defaults) ---
    loss = focal_loss(x, target, gamma=0.0, alpha=None, size_average=True)
    jax.block_until_ready(loss)
    ref = _focal_loss_ref(x, target, gamma=0.0, alpha=None, size_average=True)
    assert jnp.allclose(loss, ref, atol=1e-5, rtol=1e-5), (loss, ref)

    # --- exercise the gamma / alpha paths ---
    loss2 = focal_loss(x, target, gamma=2.0, alpha=[0.1, 0.2, 0.3, 0.4])
    jax.block_until_ready(loss2)
    ref2 = _focal_loss_ref(x, target, gamma=2.0, alpha=[0.1, 0.2, 0.3, 0.4])
    assert jnp.allclose(loss2, ref2, atol=1e-5, rtol=1e-5), (loss2, ref2)

    # --- exercise the multi-tile (accumulator) path with a small block ---
    loss3 = focal_loss(x, target, gamma=2.0, alpha=None, block_hw=128)
    jax.block_until_ready(loss3)
    ref3 = _focal_loss_ref(x, target, gamma=2.0, alpha=None)
    assert jnp.allclose(loss3, ref3, atol=1e-5, rtol=1e-5), (loss3, ref3)

    # --- MultiTaskLossWrapper_seg forward (log_vars initialised to (0, 0)) ---
    log_vars = jnp.zeros((2,), jnp.float32)

    # TODO(synk): the PyTorch spec never defines loss_fn; loss_fn[0] here uses
    # the Pallas focal seg-loss and zero placeholders for loss1/loss2/loss3.
    def seg_loss_fn(out, tgt, w):
        sl = focal_loss(out, tgt, gamma=2.0, alpha=w)
        z = jnp.float32(0.0)
        return sl, z, z, z

    outs = multi_task_loss_wrapper_seg_forward(
        (x,), (target,), (None,), log_vars, (seg_loss_fn,))
    jax.block_until_ready(outs[0])
    # with log_vars == 0 the wrapped loss must equal 0.5 * seg_loss
    assert jnp.allclose(outs[0], 0.5 * outs[1], atol=1e-6), (outs[0], outs[1])

    print("KERNEL_OK")
</pallas_src>

<mosaic_0001>
module attributes {stable_mosaic.version = 11 : i64} {
  func.func @_focal_seg_kernel(%arg0: i32, %arg1: i32, %arg2: memref<1x4x256xf32, #tpu.memory_space<vmem>>, %arg3: memref<1x1x256xi32, #tpu.memory_space<vmem>>, %arg4: memref<1x1x128xf32, #tpu.memory_space<vmem>>) attributes {dimension_semantics = [#tpu.dimension_semantics<parallel>, #tpu.dimension_semantics<arbitrary>], iteration_bounds = array<i64: 2, 1>, scalar_prefetch = 0 : i64, scratch_operands = 0 : i64, tpu.core_type = #tpu.core_type<tc>, window_params = [{transform_indices = @transform_0, window_bounds = array<i64: 1, 4, 256>}, {transform_indices = @transform_1, window_bounds = array<i64: 1, 1, 256>}, {transform_indices = @transform_2, window_bounds = array<i64: 1, 1, 128>}]} {
    %c0 = arith.constant 0 : index
    %c0_0 = arith.constant 0 : index
    %c0_1 = arith.constant 0 : index
    %0 = vector.load %arg2[%c0, %c0_0, %c0_1] : memref<1x4x256xf32, #tpu.memory_space<vmem>>, vector<1x4x256xf32>
    %1 = vector.shape_cast %0 : vector<1x4x256xf32> to vector<4x256xf32>
    %c0_2 = arith.constant 0 : index
    %c0_3 = arith.constant 0 : index
    %c0_4 = arith.constant 0 : index
    %2 = vector.load %arg3[%c0_2, %c0_3, %c0_4] : memref<1x1x256xi32, #tpu.memory_space<vmem>>, vector<1x1x256xi32>
    %3 = vector.shape_cast %2 : vector<1x1x256xi32> to vector<1x256xi32>
    %cst = arith.constant dense<0xFF800000> : vector<256xf32>
    %4 = vector.multi_reduction <maximumf>, %1, %cst [0] : vector<4x256xf32> to vector<256xf32>
    %5 = vector.shape_cast %4 : vector<256xf32> to vector<1x256xf32>
    %6 = vector.broadcast %5 : vector<1x256xf32> to vector<4x256xf32>
    %7 = arith.subf %1, %6 : vector<4x256xf32>
    %8 = math.exp %7 : vector<4x256xf32>
    %cst_5 = arith.constant dense<0.000000e+00> : vector<256xf32>
    %9 = vector.multi_reduction <add>, %8, %cst_5 [0] : vector<4x256xf32> to vector<256xf32>
    %10 = vector.shape_cast %9 : vector<256xf32> to vector<1x256xf32>
    %11 = tpu.iota {dimensions = array<i32: 0>} : vector<4x256xi32>
    %12 = vector.broadcast %3 : vector<1x256xi32> to vector<4x256xi32>
    %13 = arith.cmpi eq, %11, %12 : vector<4x256xi32>
    %cst_6 = arith.constant 0.000000e+00 : f32
    %14 = vector.broadcast %cst_6 : f32 to vector<4x256xf32>
    %15 = arith.select %13, %7, %14 : vector<4x256xi1>, vector<4x256xf32>
    %cst_7 = arith.constant dense<0.000000e+00> : vector<256xf32>
    %16 = vector.multi_reduction <add>, %15, %cst_7 [0] : vector<4x256xf32> to vector<256xf32>
    %17 = vector.shape_cast %16 : vector<256xf32> to vector<1x256xf32>
    %18 = math.log %10 : vector<1x256xf32>
    %19 = arith.subf %17, %18 : vector<1x256xf32>
    %cst_8 = arith.constant 0.000000e+00 : f32
    %20 = vector.broadcast %cst_8 : f32 to vector<1x256xf32>
    %21 = arith.subf %20, %19 : vector<1x256xf32>
    %cst_9 = arith.constant 0.000000e+00 : f32
    %22 = vector.broadcast %cst_9 : f32 to vector<1x1x128xf32>
    %23 = vector.shape_cast %21 : vector<1x256xf32> to vector<1x1x256xf32>
    %cst_10 = arith.constant dense<0.000000e+00> : vector<1xf32>
    %24 = vector.multi_reduction <add>, %23, %cst_10 [1, 2] : vector<1x1x256xf32> to vector<1xf32>
    %25 = vector.shape_cast %24 : vector<1xf32> to vector<1x1x1xf32>
    %26 = vector.extract %25[0, 0, 0] : f32 from vector<1x1x1xf32>
    %27 = vector.broadcast %26 : f32 to vector<1x1x128xf32>
    %28 = arith.addf %22, %27 : vector<1x1x128xf32>
    %c0_11 = arith.constant 0 : index
    %c0_12 = arith.constant 0 : index
    %c0_13 = arith.constant 0 : index
    %29 = vector.load %arg4[%c0_11, %c0_12, %c0_13] : memref<1x1x128xf32, #tpu.memory_space<vmem>>, vector<1x1x128xf32>
    tpu.vector_store %arg4[%c0_11, %c0_12, %c0_13], %28 {strides = array<i32>} : memref<1x1x128xf32, #tpu.memory_space<vmem>>, vector<1x1x128xf32>,
    return
  }
  func.func @transform_0(%arg0: i32, %arg1: i32) -> (i32, i32, i32) {
    %c0_i32 = arith.constant 0 : i32
    %c0_i32_0 = arith.constant 0 : i32
    return %arg0, %c0_i32, %arg1 : i32, i32, i32
  }
  func.func @transform_1(%arg0: i32, %arg1: i32) -> (i32, i32, i32) {
    %c0_i32 = arith.constant 0 : i32
    %c0_i32_0 = arith.constant 0 : i32
    return %arg0, %c0_i32, %arg1 : i32, i32, i32
  }
  func.func @transform_2(%arg0: i32, %arg1: i32) -> (i32, i32, i32) {
    %c0_i32 = arith.constant 0 : i32
    %c0_i32_0 = arith.constant 0 : i32
    %c0_i32_1 = arith.constant 0 : i32
    return %arg0, %c0_i32, %c0_i32_0 : i32, i32, i32
  }
}

</mosaic_0001>

<bundles_post_ra>
// kernel: tpu_custom_call.1
= control target key start
LH: loop header
LB: loop body
LE: loop exit
PB: predicated region body
PF: predicated region fallthrough
CT: control target
= control target key end

     0   :  { %7 = vsyncpa [#allocation3], 0  ;;  %s913_s0 = inlined_call_operand.hbm [shape: f32[2,4,256], index: 0, kind: input, shape index: {}]   ;;  %s914_s1 = inlined_call_operand.hbm [shape: s32[2,1,256], index: 1, kind: input, shape index: {}]   ;;  %s915_s2 = inlined_call_operand.hbm [shape: f32[2,1,128], index: 2, kind: output, shape index: {}]  }
   0x1   :  { %9 = vsyncpa [#allocation3 + $0x1], 0 }
   0x2   :  { %10 = vsyncpa [#allocation6], 0 }
   0x3   :  { %12 = vsyncpa [#allocation6 + $0x1], 0 }
   0x4   :  { %13 = vsyncpa [#allocation4], 0 }
   0x5   :  { %15 = vsyncpa [#allocation4 + $0x1], 0  ;;  %s691_s9 = smov 0   ;;  %s693_s10 = smov 0  }
   0x6   :  { %s695_s11 = smov 0   ;;  %s697_s12 = smov 0  }
   0x7   :  { %s699_s13 = smov 0   ;;  %s701_s14 = smov 0  }
   0x8 LB: > { %s431_s15 = sadd.s32 4294967295, %s671_s14   ;;  %s432_s16 = sadd.s32 4294967294, %s671_s14   ;;  %s671_s14 = sphi %s701_s14, %s21_s14   ;;  %s667_s13 = sphi %s699_s13, %s935_s13   ;;  %s663_s12 = sphi %s697_s12, %s934_s12   ;;  %s659_s11 = sphi %s695_s11, %s933_s11   ;;  %s655_s10 = sphi %s693_s10, %s932_s10   ;;  %s651_s9 = sphi %s691_s9, %s931_s9  }
   0x9   : > { %s33_s17 = sadd.s32 1, %s667_s13  ;;  %s42_s18 = sadd.s32 1, %s659_s11 }
   0xa   : > { %p35_p0 = scmp.ge.s32.totalorder %s33_s17, 2  ;;  %p49_p1 = scmp.ne.s32.totalorder %s659_s11, %s655_s10 }
   0xb   : > { %p50_p2 = scmp.eq.s32.totalorder %s671_s14, 0  ;;  %p55_p3 = scmp.ne.s32.totalorder %s655_s10, %s651_s9 }
   0xc   : > { %s937_s17 = smov (%p35_p0, %s33_s17), 0  ;;  %p56_p5 = scmp.eq.s32.totalorder %s431_s15, 0 }
   0xd   : > { %p732_p4 = por %p50_p2, %p49_p1  ;;  %s37_s20 = ssub.s32 %s667_s13, %s937_s17 }
   0xe   : > { %p107_p6 = scmp.eq.s32.totalorder %s431_s15, 1  ;;  %p40_p7 = scmp.eq.s32.totalorder %s37_s20, 0 }
   0xf   : > { %p738_p8 = por %p56_p5, %p55_p3  ;;  %p113_p10 = scmp.eq.s32.totalorder %s432_s16, 1 }
  0x10   : > { %p742_p9 = por %p107_p6, %p49_p1  ;;  %p468_p13 = scmp.lt.s32.totalorder %s671_s14, 2 }
  0x11   : > { %s919_s21 = scalar_select %p738_p8, 1, 0 }
  0x12   : > { %s920_s22 = scalar_select %p742_p9, 1, 0 }
  0x13   : > { %s747_s23 = scalar_select %p40_p7, %s659_s11, %s42_s18  }
  0x14   : > { %p749_p11 = por %p113_p10, %p55_p3  ;;  %s756_s25 = sand.u32 1, %s659_s11  }
  0x15   : > { %s435_s26 = sshll.u32 %s756_s25, 3  ;;  %s447_s27 = sshll.u32 %s667_s13, 7 }
  0x16   : > { %s921_s24 = scalar_select %p749_p11, 1, 0 }
  0x17   : > { %s763_s30 = scalar_lea.hbm %s913_s0, %s447_s27  ;;  %s137_s3 = scalar_lea.vmem [#allocation2], %s435_s26 }
  0x18   : > { %s147_s4 = sshll.u32 %s137_s3, 4  ;;  %p769_p0 = pnand %p468_p13, %p732_p4  ;;  %s765_s4 = int_to_ptr.vmem [resolvable:$true] %s147_s4 }
  0x19   : > { %s134_s6 = scalar_lea.sflag [#allocation3], %s756_s25  ;;  %s525_s7 = scalar_lea.hbm %s763_s30, 128 }
  0x1a   : > { %p526_p3 = scmp.ne.s32.totalorder %s763_s30, %s525_s7  ;;  %p527_p5 = pneg %p769_p0 }
  0x1b   : > { %s530_s16 = scalar_lea.hbm %s913_s0, 256  ;;  %p531_p4 = scmp.lt.u32.totalorder %s763_s30, %s913_s0 }
  0x1c   : > { %p528_p6 = pnand %p527_p5, %p526_p3  ;;  %p532_p10 = scmp.lt.u32.totalorder %s530_s16, %s525_s7 }
  0x1d   : > { %p534_p12 = scmp.lt.u32.totalorder %s525_s7, %s763_s30 }
  0x1e   : > { %p529_p7 = pneg %p528_p6  ;;  %p533_p13 = por %p532_p10, %p531_p4 }
  0x20   : > { %p535_p1 = por %p534_p12, %p533_p13 }
  0x22   : > { %p536_p2 = pnand %p535_p1, %p529_p7 }
  0x24   : > { %539 = shalt.err (!%p536_p2)
}
  0x25   : > { %s540_s20 = scalar_lea.vmem %s765_s4, 128  ;;  %s673_s26 = smov [#allocation2]  }
  0x26   : > { %p541_p3 = scmp.ne.s32.totalorder %s765_s4, %s540_s20  ;;  %s545_s27 = sshll.u32 %s673_s26, 4  ;;  %s546_s27 = int_to_ptr.vmem [resolvable:$false] %s545_s27 }
  0x27   : > { %s547_s28 = scalar_lea.vmem %s546_s27, 256  ;;  %p548_p9 = scmp.lt.s32.totalorder %s765_s4, %s546_s27 }
  0x28   : > { %p543_p6 = pnand %p541_p3, %p527_p5  ;;  %p549_p4 = scmp.lt.s32.totalorder %s547_s28, %s540_s20 }
  0x2a   : > { %p544_p11 = pneg %p543_p6  ;;  %p550_p10 = por %p549_p4, %p548_p9 }
  0x2c   : > { %p551_p12 = pnand %p550_p10, %p544_p11 }
  0x2e   : > { %554 = shalt.err (!%p551_p12)
}
  0x2f   : > { %460 = dma.hbm_to_vmem [thread:$0]  (!%p769_p0), %s763_s30, 128, %s765_s4, %s134_s6  }
  0x30   : > { %p923_p1 = scmp.lt.s32.totalorder %s671_s14, 3  ;;  %p924_p2 = scmp.ge.s32.totalorder %s671_s14, 1 }
  0x31   : > { %s438_s3 = sshll.u32 %s756_s25, 1  ;;  %s448_s7 = sshll.u32 %s667_s13, 5 }
  0x32   : > { %p805_p7 = pnand %p924_p2, %p923_p1  ;;  %s814_s16 = scalar_lea.hbm %s914_s1, %s448_s7 }
  0x33   : > { %s158_s18 = scalar_lea.vmem [#allocation5], %s438_s3  ;;  %s155_s30 = scalar_lea.sflag [#allocation6], %s756_s25 }
  0x34   : > { %s925_s29 = scalar_select %p805_p7, 1, 0 }
  0x35   : > { %s168_s19 = sshll.u32 %s158_s18, 4  ;;  %s555_s4 = scalar_lea.hbm %s814_s16, 32  ;;  %s169_s19 = int_to_ptr.vmem [resolvable:$true] %s168_s19 }
  0x36   : > { %p556_p9 = scmp.ne.s32.totalorder %s814_s16, %s555_s4  ;;  %s560_s26 = scalar_lea.hbm %s914_s1, 64 }
  0x37   : > { %p561_p3 = scmp.lt.u32.totalorder %s814_s16, %s914_s1  ;;  %p562_p6 = scmp.lt.u32.totalorder %s560_s26, %s555_s4 }
  0x38   : > { %p558_p11 = pnand %p556_p9, %p527_p5  ;;  %p564_p10 = scmp.lt.u32.totalorder %s555_s4, %s814_s16 }
  0x39   : > { %p563_p4 = por %p562_p6, %p561_p3 }
  0x3a   : > { %p559_p13 = pneg %p558_p11 }
  0x3b   : > { %p565_p12 = por %p564_p10, %p563_p4 }
  0x3d   : > { %p566_p1 = pnand %p565_p12, %p559_p13 }
  0x3f   : > { %569 = shalt.err (!%p566_p1)
}
  0x40   : > { %s570_s25 = scalar_lea.vmem %s169_s19, 32  ;;  %s674_s3 = smov [#allocation5]  }
  0x41   : > { %p571_p2 = scmp.ne.s32.totalorder %s169_s19, %s570_s25  ;;  %s575_s7 = sshll.u32 %s674_s3, 4  ;;  %s576_s7 = int_to_ptr.vmem [resolvable:$false] %s575_s7 }
  0x42   : > { %s577_s8 = scalar_lea.vmem %s576_s7, 64  ;;  %p578_p8 = scmp.lt.s32.totalorder %s169_s19, %s576_s7 }
  0x43   : > { %p573_p9 = pnand %p571_p2, %p527_p5  ;;  %p579_p7 = scmp.lt.s32.totalorder %s577_s8, %s570_s25 }
  0x45   : > { %p574_p11 = pneg %p573_p9  ;;  %p580_p3 = por %p579_p7, %p578_p8 }
  0x47   : > { %p581_p6 = pnand %p580_p3, %p574_p11 }
  0x49   : > { %584 = shalt.err (!%p581_p6)
}
  0x4a   : > { %463 = dma.hbm_to_vmem [thread:$0]  (!%p769_p0), %s814_s16, 32, %s169_s19, %s155_s30  }
  0x4b   : > { %p926_p13 = scmp.ne.s32.totalorder %s925_s29, 0 }
  0x4c   : > { %s839_s15 = sand.u32 (!%p926_p13), 1, %s655_s10   ;;  %p927_p5 = scmp.ne.s32.totalorder (!%p926_p13), %s919_s21, 0 }
  0x4d   : > { %177 = sbr.rel (%p926_p13) target bundleno = 375 (0x177), region = 28  ;;  %s442_s18 = sshll.u32 (!%p926_p13), %s839_s15, 3 }
  0x4e   : > { %s180_s4 = scalar_lea.sflag (!%p926_p13), [#allocation3], %s839_s15  ;;  %s183_s6 = scalar_lea.vmem (!%p926_p13), [#allocation2], %s442_s18 }
  0x54   : > { %638 = dma.done.wait (%p927_p5), %s180_s4, 128  }
  0x55   : > { %640 = vsyncadd (%p927_p5), %s180_s4, 4294967168  ;;  %s443_s5 = sshll.u32 %s839_s15, 1  ;;  %s189_s29 = scalar_lea.sflag [#allocation6], %s839_s15 }
  0x56   : > { %s192_s16 = scalar_lea.vmem [#allocation5], %s443_s5 }
  0x57   : > { %642 = dma.done.wait (%p927_p5), %s189_s29, 32  }
  0x58   : > { %644 = vsyncadd (%p927_p5), %s189_s29, 4294967264  ;;  %vm224_vm0 = vcmask 1043456   ;;  %v219_v0 = vld [vmem:[%s183_s6] sm:$0xff]  ;;  %v263_v13 = vlaneseq  ;;  %v220_v21 = vld [vmem:[%s192_s16] sm:$0x3]  ;;  %vm302_vm3 = vcmask 1040384  }
  0x59   : > { %v222_v1 = vcombine.high %v219_v0, %v219_v0  ;;  %v225_v2 = vsel %vm224_vm0, %v219_v0, -inf  ;;  %s216_s21 = scalar_lea.vmem [#allocation7], %s839_s15  ;;  %s444_s30 = sshll.u32 %s663_s12, 4 }
  0x5a   : > { %v226_v3 = vrot.slane %v225_v2, 4  ;;  %v264_v17 = vshrl.u32 %v263_v13, 7  ;;  %s331_s19 = sshll.u32 %s216_s21, 4  ;;  %s866_s28 = scalar_lea.hbm %s915_s2, %s444_s30  ;;  %s861_s19 = int_to_ptr.vmem [resolvable:$true] %s331_s19 }
  0x5b   : > { %v232_v4 = vsel %vm224_vm0, %v222_v1, -inf  ;;  %s319_s25 = scalar_lea.sflag [#allocation4], %s839_s15  ;;  %s585_s3 = scalar_lea.vmem %s861_s19, 16 }
  0x5c   : > { %v227_v5 = vmax.f32 %v225_v2, %v226_v3  ;;  %v233_v6 = vrot.slane %v232_v4, 4  ;;  %v267_v20 = vsub.s32 0, %v264_v17  ;;  %v271_v23 = vsub.s32 1, %v264_v17  ;;  %p586_p8 = scmp.ne.s32.totalorder %s861_s19, %s585_s3  ;;  %p928_p0 = scmp.ne.s32.totalorder %s920_s22, 0 }
  0x5d   : > { %s675_s12 = smov [#allocation7]  }
  0x5e   : > { %v228_v7 = vrot.slane %v227_v5, 2  ;;  %v234_v8 = vmax.f32 %v232_v4, %v233_v6  ;;  %v268_v24 = vrot.slane %v220_v21, %v267_v20  ;;  %v272_v25 = vrot.slane %v220_v21, %v271_v23  ;;  %p587_p7 = pnand %p586_p8, %p928_p0  ;;  %s589_s7 = sshll.u32 %s675_s12, 4  ;;  %s590_s7 = int_to_ptr.vmem [resolvable:$false] %s589_s7 }
  0x5f   : > { %s591_s8 = scalar_lea.vmem %s590_s7, 32  ;;  %p592_p10 = scmp.lt.s32.totalorder %s861_s19, %s590_s7 }
  0x60   : > { %v229_v9 = vmax.f32 %v227_v5, %v228_v7  ;;  %v235_v10 = vrot.slane %v234_v8, 2  ;;  %vm273_vm1 = vcmp.eq.s32.totalorder %v264_v17, %v268_v24  ;;  %vm274_vm2 = vcmp.eq.s32.totalorder %v264_v17, %v272_v25  ;;  %p588_p4 = pneg %p587_p7  ;;  %p593_p12 = scmp.lt.s32.totalorder %s591_s8, %s585_s3 }
  0x62   : > { %v230_v11 = vrot.slane %v229_v9, 1  ;;  %v236_v12 = vmax.f32 %v234_v8, %v235_v10  ;;  %p594_p1 = por %p593_p12, %p592_p10 }
  0x64   : > { %v231_v14 = vmax.f32 %v229_v9, %v230_v11  ;;  %v237_v15 = vrot.slane %v236_v12, 1  ;;  %p595_p2 = pnand %p594_p1, %p588_p4 }
  0x66   : > { %v238_v16 = vmax.f32 %v236_v12, %v237_v15 }
  0x68   : > { %v241_v18 = vcombine.low %v231_v14, %v238_v16 }
  0x6a   : > { %v243_v19 = vsub.f32 %v219_v0, %v241_v18 }
  0x6c   : > { %v244_v22 = vmul.f32 1.442695, %v243_v19  ;;  %v276_v26 = vcombine.high %v243_v19, %v243_v19  ;;  %v278_v27 = vsel %vm273_vm1, %v243_v19, 0.0 }
  0x6d   : > { %v280_v30 = vsel %vm224_vm0, %v278_v27, 0.0 }
  0x6e   : > { %519 = vpow2.f32 %v244_v22  ;;  %v279_v28 = vsel %vm274_vm2, %v276_v26, 0.0  ;;  %v281_v36 = vrot.slane %v280_v30, 4 }
  0x6f   : > { %v287_v34 = vsel %vm224_vm0, %v279_v28, 0.0 }
  0x70   : > { %v288_v39 = vrot.slane %v287_v34, 4  ;;  %v282_v42 = vadd.f32 %v281_v36, %v280_v30 }
  0x72   : > { %v289_v45 = vadd.f32 %v288_v39, %v287_v34  ;;  %v283_v48 = vrot.slane %v282_v42, 2 }
  0x74   : > { %v290_v51 = vrot.slane %v289_v45, 2  ;;  %v284_v53 = vadd.f32 %v283_v48, %v282_v42 }
  0x76   : > { %v291_v54 = vadd.f32 %v290_v51, %v289_v45  ;;  %v285_v55 = vrot.slane %v284_v53, 1 }
  0x78   : > { %v520_v29 = vpop.eup %519  ;;  %v292_v56 = vrot.slane %v291_v54, 1  ;;  %v286_v57 = vadd.f32 %v285_v55, %v284_v53 }
  0x79   : > { %v247_v31 = vcombine.high %v520_v29, %v520_v29  ;;  %v249_v32 = vsel %vm224_vm0, %v520_v29, 0.0 }
  0x7a   : > { %v250_v33 = vrot.slane %v249_v32, 4  ;;  %v293_v59 = vadd.f32 %v292_v56, %v291_v54 }
  0x7b   : > { %v256_v35 = vsel %vm224_vm0, %v247_v31, 0.0 }
  0x7c   : > { %v251_v37 = vadd.f32 %v250_v33, %v249_v32  ;;  %v257_v38 = vrot.slane %v256_v35, 4 }
  0x7e   : > { %v252_v40 = vrot.slane %v251_v37, 2  ;;  %v258_v41 = vadd.f32 %v257_v38, %v256_v35 }
  0x80   : > { %v253_v43 = vadd.f32 %v252_v40, %v251_v37  ;;  %v259_v44 = vrot.slane %v258_v41, 2 }
  0x82   : > { %v254_v46 = vrot.slane %v253_v43, 1  ;;  %v260_v47 = vadd.f32 %v259_v44, %v258_v41 }
  0x84   : > { %v255_v49 = vadd.f32 %v254_v46, %v253_v43  ;;  %v261_v50 = vrot.slane %v260_v47, 1 }
  0x86   : > { %v262_v52 = vadd.f32 %v261_v50, %v260_v47  ;;  %521 = vlog2.f32 %v255_v49 }
  0x88   : > { %523 = vlog2.f32 %v262_v52 }
  0x90   : > { %v522_v58 = vpop.eup %521 }
  0x91   : > { %v295_v60 = vmul.f32 0.6931472, %v522_v58 }
  0x92   : > { %v524_v61 = vpop.eup %523 }
  0x93   : > { %v297_v62 = vmul.f32 0.6931472, %v524_v61  ;;  %v298_v63 = vsub.f32 %v286_v57, %v295_v60 }
  0x95   : > { %v299_v0 = vsub.f32 %v293_v59, %v297_v62  ;;  %v300_v1 = vsub.f32 0.0, %v298_v63 }
  0x97   : > { %v301_v2 = vsub.f32 0.0, %v299_v0  ;;  %v303_v3 = vsel %vm302_vm3, %v300_v1, 0.0 }
  0x99   : > { %v304_v4 = vsel %vm302_vm3, %v301_v2, 0.0 }
  0x9a   : > { %v305_v5 = vadd.f32 %v304_v4, %v303_v3 }
  0x9c   : > { %306 = vadd.xlane.f32.xlu0 %v305_v5 }
 0x129   : > { %v307_v6 = vpop.xlane.xlu0 %306 }
 0x12a   : > { %v308_v7 = vrot.slane %v307_v6, 4 }
 0x12c   : > { %v309_v8 = vadd.f32 %v308_v7, %v307_v6 }
 0x12e   : > { %v310_v9 = vrot.slane %v309_v8, 2 }
 0x130   : > { %v311_v10 = vadd.f32 %v310_v9, %v309_v8 }
 0x132   : > { %v312_v11 = vrot.slane %v311_v10, 1 }
 0x134   : > { %v313_v12 = vadd.f32 %v312_v11, %v311_v10 }
 0x136   : > { %449 = vpush %v313_v12 }
 0x167   : > { %s450_s20 = spop %449 }
 0x168   : > { %v315_v13 = vstv %s450_s20 }
 0x169   : > { %317 = vst [vmem:[%s216_s21] sm:$0x1] %v315_v13 }
 0x16a   : > { %598 = shalt.err (!%p595_p2)
}
 0x16b   : > { %s599_s15 = scalar_lea.hbm %s866_s28, 16  ;;  %s603_s6 = scalar_lea.hbm %s915_s2, 32 }
 0x16c   : > { %p600_p9 = scmp.ne.s32.totalorder %s866_s28, %s599_s15  ;;  %p604_p6 = scmp.lt.u32.totalorder %s866_s28, %s915_s2 }
 0x16d   : > { %p605_p13 = scmp.lt.u32.totalorder %s603_s6, %s599_s15  ;;  %p607_p8 = scmp.lt.u32.totalorder %s599_s15, %s866_s28 }
 0x16e   : > { %p601_p11 = pnand %p600_p9, %p928_p0 }
 0x16f   : > { %p606_p5 = por %p605_p13, %p604_p6 }
 0x170   : > { %p602_p3 = pneg %p601_p11 }
 0x171   : > { %p608_p7 = por %p607_p8, %p606_p5 }
 0x173   : > { %p609_p4 = pnand %p608_p7, %p602_p3 }
 0x175   : > { %612 = shalt.err (!%p609_p4)
}
 0x176   : > { %455 = dma.vmem_to_hbm [thread:$0]  (%p928_p0), %s861_s19, 16, %s866_s28, %s319_s25  }
 0x177 PF: > { %s343_s16 = sand.u32 1, %s651_s9   ;;  %p929_p10 = scmp.ne.s32.totalorder %s921_s24, 0 }
 0x178   : > { %p930_p12 = scmp.ge.s32.totalorder %s671_s14, 2  ;;  %s344_s21 = scalar_lea.sflag [#allocation4], %s343_s16 }
 0x17a   : > { %p465_p1 = pnand %p930_p12, %p929_p10 }
 0x17c   : > { %646 = dma.done.wait (!%p465_p1), %s344_s21, 16  }
 0x17d   : > { %648 = vsyncadd (!%p465_p1), %s344_s21, 4294967280  ;;  %s21_s14 = sadd.s32 1, %s671_s14   ;;  %s931_s9 = smov %s655_s10 }
 0x17e   : > { %p18_p2 = scmp.ge.s32.totalorder %s21_s14, 4   ;;  %s932_s10 = smov %s659_s11 }
 0x17f   : > { %s933_s11 = smov %s747_s23  ;;  %s934_s12 = smov %s667_s13 }
 0x180   : > { %s935_s13 = smov %s937_s17  ;;  %20 = sbr.rel (!%p18_p2) target bundleno = 8 (0x8), region = 86 }
 0x187   :  { %348 = vsyncpa [#allocation3], 1 }
 0x188   :  { %350 = vsyncpa [#allocation3 + $0x1], 1 }
 0x189   :  { %351 = vsyncpa [#allocation6], 1 }
 0x18a   :  { %353 = vsyncpa [#allocation6 + $0x1], 1 }
 0x18b   :  { %354 = vsyncpa [#allocation4], 1 }
 0x18c   :  { %356 = vsyncpa [#allocation4 + $0x1], 1 }

</bundles_post_ra>
